<compile_context>
chip_gen: v5e
topology: v5e:2x2
jax: 0.10.0
libtpu: 0.0.40
codegen_flags: <defaults>
</compile_context>

<pallas_src>
from functools import partial

import jax
import jax.numpy as jnp
import numpy as np
from jax.experimental import pallas as pl
from jax.experimental.pallas import tpu as pltpu

# Problem sizes (CartPole-like env: obs dim 4, 2 discrete actions).
SPACE = 4
HIDDEN = 32
ACTION = 2

# TPU-friendly padded sizes (minimal legal tiles).
ROW_PAD = 8          # sublane batch: up to 8 states per kernel call
S_PAD = 8            # contraction dim of fc1 (sublane-aligned)
H_PAD = HIDDEN       # 32 — multiple of 8, used exactly (no lane waste on w2 rows)
A_PAD = 128          # lane-dense output slab


def agent_kernel(x_ref, w1_ref, b1_ref, w2_ref, b2_ref, o_ref):
    # fc1 + relu                                           x: (8, S_PAD)
    h = jnp.dot(x_ref[...], w1_ref[...],
                preferred_element_type=jnp.float32) + b1_ref[...]
    h = jnp.maximum(h, 0.0)                               # (8, H_PAD)
    # fc2 + tanh
    o = jnp.dot(h, w2_ref[...],
                preferred_element_type=jnp.float32) + b2_ref[...]
    o = jnp.tanh(o)                                       # (8, A_PAD)
    # softmax over the action axis, masking padded action columns.
    col = jax.lax.broadcasted_iota(jnp.int32, o.shape, 1)
    valid = col < ACTION
    o = jnp.where(valid, o, -jnp.inf)
    m = jnp.max(o, axis=-1, keepdims=True)
    e = jnp.where(valid, jnp.exp(o - m), 0.0)
    denom = jnp.sum(e, axis=-1, keepdims=True)
    o_ref[...] = e * pl.reciprocal(denom, approx=False)


def pad_params(w1, b1, w2, b2):
    """Pad the weights ONCE (call at init / after set_weights, not per step)."""
    f32 = jnp.float32
    w1p = jnp.zeros((S_PAD, H_PAD), f32).at[:SPACE, :HIDDEN].set(w1.astype(f32))
    b1p = jnp.zeros((1, H_PAD), f32).at[0, :HIDDEN].set(b1.astype(f32))
    w2p = jnp.zeros((H_PAD, A_PAD), f32).at[:HIDDEN, :ACTION].set(w2.astype(f32))
    b2p = jnp.zeros((1, A_PAD), f32).at[0, :ACTION].set(b2.astype(f32))
    return w1p, b1p, w2p, b2p


_vmem_spec = pl.BlockSpec(memory_space=pltpu.MemorySpace.VMEM)

_agent_call = pl.pallas_call(
    agent_kernel,
    out_shape=jax.ShapeDtypeStruct((ROW_PAD, A_PAD), jnp.float32),
    in_specs=[_vmem_spec] * 5,
    out_specs=_vmem_spec,
)


@partial(jax.jit, static_argnames=())
def agent_forward_batch(xs, w1p, b1p, w2p, b2p):
    """xs: (B, SPACE) with B <= 8. Returns (B, ACTION) action probabilities."""
    B = xs.shape[0]
    xp = jnp.zeros((ROW_PAD, S_PAD), jnp.float32).at[:B, :SPACE].set(
        xs.astype(jnp.float32))
    out = _agent_call(xp, w1p, b1p, w2p, b2p)
    return out[:B, :ACTION]


def agent_forward(x, w1p, b1p, w2p, b2p):
    """Single 1-D state (SPACE,) -> (ACTION,) probabilities (original semantics)."""
    return agent_forward_batch(x[None, :], w1p, b1p, w2p, b2p)[0]


def init_params(key):
    """Deterministic init mimicking torch.nn.Linear defaults (uniform +/- 1/sqrt(fan_in))."""
    k1, k2, k3, k4 = jax.random.split(key, 4)
    lim1 = 1.0 / np.sqrt(SPACE)
    lim2 = 1.0 / np.sqrt(HIDDEN)
    w1 = jax.random.uniform(k1, (SPACE, HIDDEN), jnp.float32, -lim1, lim1)
    b1 = jax.random.uniform(k2, (HIDDEN,), jnp.float32, -lim1, lim1)
    w2 = jax.random.uniform(k3, (HIDDEN, ACTION), jnp.float32, -lim2, lim2)
    b2 = jax.random.uniform(k4, (ACTION,), jnp.float32, -lim2, lim2)
    return w1, b1, w2, b2


def reference_forward(x, w1, b1, w2, b2):
    h = jnp.maximum(x @ w1 + b1, 0.0)
    o = jnp.tanh(h @ w2 + b2)
    return jax.nn.softmax(o, axis=0)   # torch.softmax(..., dim=0) on a 1-D tensor


if __name__ == "__main__":
    key = jax.random.PRNGKey(0)
    kx, kp = jax.random.split(key)
    BATCH = 8
    xs = jax.random.normal(kx, (BATCH, SPACE), jnp.float32)
    w1, b1, w2, b2 = init_params(kp)

    # Pad weights once, reuse across forward calls.
    w1p, b1p, w2p, b2p = pad_params(w1, b1, w2, b2)

    # Batched forward (8 states per kernel call).
    out_batch = agent_forward_batch(xs, w1p, b1p, w2p, b2p)
    out_batch = jax.block_until_ready(out_batch)

    ref_batch = jax.vmap(lambda x: reference_forward(x, w1, b1, w2, b2))(xs)
    np.testing.assert_allclose(np.asarray(out_batch), np.asarray(ref_batch),
                               rtol=1e-5, atol=1e-6)

    # Single-state path (original torch forward semantics on a 1-D state).
    out_single = agent_forward(xs[0], w1p, b1p, w2p, b2p)
    out_single = jax.block_until_ready(out_single)
    np.testing.assert_allclose(np.asarray(out_single), np.asarray(ref_batch[0]),
                               rtol=1e-5, atol=1e-6)

    print("KERNEL_OK")
</pallas_src>

<mosaic_0001>
module attributes {stable_mosaic.version = 11 : i64} {
  func.func @agent_kernel(%arg0: memref<8x8xf32, #tpu.memory_space<vmem>>, %arg1: memref<8x32xf32, #tpu.memory_space<vmem>>, %arg2: memref<1x32xf32, #tpu.memory_space<vmem>>, %arg3: memref<32x128xf32, #tpu.memory_space<vmem>>, %arg4: memref<1x128xf32, #tpu.memory_space<vmem>>, %arg5: memref<8x128xf32, #tpu.memory_space<vmem>>) attributes {dimension_semantics = [], scalar_prefetch = 0 : i64, scratch_operands = 0 : i64, tpu.core_type = #tpu.core_type<tc>} {
    %c0 = arith.constant 0 : index
    %c0_0 = arith.constant 0 : index
    %0 = vector.load %arg0[%c0, %c0_0] : memref<8x8xf32, #tpu.memory_space<vmem>>, vector<8x8xf32>
    %c0_1 = arith.constant 0 : index
    %c0_2 = arith.constant 0 : index
    %1 = vector.load %arg1[%c0_1, %c0_2] : memref<8x32xf32, #tpu.memory_space<vmem>>, vector<8x32xf32>
    %cst = arith.constant dense<0.000000e+00> : vector<8x32xf32>
    %2 = tpu.matmul %0, %1, %cst {dimension_numbers = #tpu.dot_dimension_numbers<[1], [0], [0], [1], [0, 0, 1, 1], [], []>} : vector<8x8xf32>, vector<8x32xf32>, vector<8x32xf32> -> vector<8x32xf32>
    %c0_3 = arith.constant 0 : index
    %c0_4 = arith.constant 0 : index
    %3 = vector.load %arg2[%c0_3, %c0_4] : memref<1x32xf32, #tpu.memory_space<vmem>>, vector<1x32xf32>
    %4 = vector.broadcast %3 : vector<1x32xf32> to vector<8x32xf32>
    %5 = arith.addf %2, %4 : vector<8x32xf32>
    %cst_5 = arith.constant 0.000000e+00 : f32
    %6 = vector.broadcast %cst_5 : f32 to vector<8x32xf32>
    %7 = arith.maximumf %5, %6 : vector<8x32xf32>
    %c0_6 = arith.constant 0 : index
    %c0_7 = arith.constant 0 : index
    %8 = vector.load %arg3[%c0_6, %c0_7] : memref<32x128xf32, #tpu.memory_space<vmem>>, vector<32x128xf32>
    %cst_8 = arith.constant dense<0.000000e+00> : vector<8x128xf32>
    %9 = tpu.matmul %7, %8, %cst_8 {dimension_numbers = #tpu.dot_dimension_numbers<[1], [0], [0], [1], [0, 0, 1, 1], [], []>} : vector<8x32xf32>, vector<32x128xf32>, vector<8x128xf32> -> vector<8x128xf32>
    %c0_9 = arith.constant 0 : index
    %c0_10 = arith.constant 0 : index
    %10 = vector.load %arg4[%c0_9, %c0_10] : memref<1x128xf32, #tpu.memory_space<vmem>>, vector<1x128xf32>
    %11 = vector.broadcast %10 : vector<1x128xf32> to vector<8x128xf32>
    %12 = arith.addf %9, %11 : vector<8x128xf32>
    %13 = math.tanh %12 : vector<8x128xf32>
    %14 = tpu.iota {dimensions = array<i32: 1>} : vector<8x128xi32>
    %c2_i32 = arith.constant 2 : i32
    %15 = vector.broadcast %c2_i32 : i32 to vector<8x128xi32>
    %16 = arith.cmpi slt, %14, %15 : vector<8x128xi32>
    %cst_11 = arith.constant 0xFF800000 : f32
    %17 = vector.broadcast %cst_11 : f32 to vector<8x128xf32>
    %18 = arith.select %16, %13, %17 : vector<8x128xi1>, vector<8x128xf32>
    %cst_12 = arith.constant dense<0xFF800000> : vector<8xf32>
    %19 = vector.multi_reduction <maximumf>, %18, %cst_12 [1] : vector<8x128xf32> to vector<8xf32>
    %20 = vector.shape_cast %19 : vector<8xf32> to vector<8x1xf32>
    %21 = vector.broadcast %20 : vector<8x1xf32> to vector<8x128xf32>
    %22 = arith.subf %18, %21 : vector<8x128xf32>
    %23 = math.exp %22 : vector<8x128xf32>
    %cst_13 = arith.constant 0.000000e+00 : f32
    %24 = vector.broadcast %cst_13 : f32 to vector<8x128xf32>
    %25 = arith.select %16, %23, %24 : vector<8x128xi1>, vector<8x128xf32>
    %cst_14 = arith.constant dense<0.000000e+00> : vector<8xf32>
    %26 = vector.multi_reduction <add>, %25, %cst_14 [1] : vector<8x128xf32> to vector<8xf32>
    %27 = vector.shape_cast %26 : vector<8xf32> to vector<8x1xf32>
    %28 = tpu.reciprocal %27 : vector<8x1xf32> -> vector<8x1xf32>
    %29 = vector.broadcast %28 : vector<8x1xf32> to vector<8x128xf32>
    %30 = arith.mulf %25, %29 : vector<8x128xf32>
    %c0_15 = arith.constant 0 : index
    %c0_16 = arith.constant 0 : index
    %31 = vector.load %arg5[%c0_15, %c0_16] : memref<8x128xf32, #tpu.memory_space<vmem>>, vector<8x128xf32>
    tpu.vector_store %arg5[%c0_15, %c0_16], %30 {strides = array<i32>} : memref<8x128xf32, #tpu.memory_space<vmem>>, vector<8x128xf32>,
    return
  }
}

</mosaic_0001>

<bundles_post_ra>
// kernel: agent_forward_batch.1
= control target key start
LH: loop header
LB: loop body
LE: loop exit
PB: predicated region body
PF: predicated region fallthrough
CT: control target
= control target key end

     0   :  { %vm26_vm0 = vcmask 64512   ;;  %vm59_vm1 = vcmask 261120   ;;  %v84_v11 = vlaneseq  ;;  %s183_s1 = inlined_call_operand.vmem [shape: f32[8,32], index: 1, kind: input, shape index: {}]   ;;  %s184_s0 = inlined_call_operand.vmem [shape: f32[8,8], index: 0, kind: input, shape index: {}]   ;;  %s185_s3 = inlined_call_operand.vmem [shape: f32[32,128], index: 3, kind: input, shape index: {}]   ;;  %s186_s2 = inlined_call_operand.vmem [shape: f32[1,32], index: 2, kind: input, shape index: {}]   ;;  %s187_s4 = inlined_call_operand.vmem [shape: f32[1,128], index: 4, kind: input, shape index: {}]   ;;  %s188_s5 = inlined_call_operand.vmem [shape: f32[8,128], index: 5, kind: output, shape index: {}]  }
   0x1   :  { %v21_v0 = vld [vmem:[%s183_s1] sm:$0xff]  ;;  %v54_v2 = vld [vmem:[%s185_s3 + $0x18] sm:$0xff]  ;;  %v53_v3 = vld [vmem:[%s185_s3 + $0x10] sm:$0xff] }
   0x2   :  { %v20_v1 = vld [vmem:[%s184_s0] sm:$0xff]  ;;  %45 = vmatpush.msra.mxu0 %v21_v0  ;;  %75 = vmatpush.msra.mxu1 %v54_v2  ;;  %v52_v4 = vld [vmem:[%s185_s3 + $0x8] sm:$0xff]  ;;  %v85_v14 = vand.u32 127, %v84_v11 }
   0x3   :  { %116 = vmatmul.msk.f32.vlgmr.msra.gmra.mxu0 %vm26_vm0, %v20_v1  ;;  %v51_v5 = vld [vmem:[%s185_s3] sm:$0xff] }
   0x4   :  { %76 = vmatpush.msra.mxu1 %v53_v3  ;;  %v118_v6 = vld [vmem:[%s186_s2] ss:$0 sm:$0xff]  ;;  %vm86_vm2 = vcmp.lt.s32.totalorder %v85_v14, 2 }
   0x5   :  { %v119_v10 = vld [vmem:[%s187_s4] ss:$0 sm:$0xff] }
   0x6   :  { %77 = vmatpush.msra.mxu1 %v52_v4 }
   0x8   :  { %78 = vmatpush.msra.mxu1 %v51_v5 }
  0x80   :  { %v47_v7 = vpop.f32.mrf.mxu0 }
  0x81   :  { %v48_v8 = vadd.f32 %v118_v6, %v47_v7 }
  0x83   :  { %v50_v9 = vmax.f32 %v48_v8, 0.0 }
  0x85   :  { %117 = vmatmul.msk.f32.vlgmr.msra.gmra.mxu1 %vm59_vm1, %v50_v9 }
 0x102   :  { %v80_v12 = vpop.f32.mrf.mxu1 }
 0x103   :  { %v81_v13 = vadd.f32 %v119_v10, %v80_v12 }
 0x105   :  { %120 = vtanh.f32 %v81_v13 }
 0x10b   :  { %v121_v15 = vpop.eup %120 }
 0x10c   :  { %v87_v16 = vsel %vm86_vm2, %v121_v15, -inf }
 0x10d   :  { %88 = vmax.xlane.f32.xlu0 %v87_v16 }
 0x180   :  { %v89_v17 = vpop.xlane.xlu0 %88 }
 0x181   :  { %v90_v18 = vsub.f32 %v87_v16, %v89_v17 }
 0x183   :  { %v91_v19 = vmul.f32 1.442695, %v90_v18 }
 0x185   :  { %122 = vpow2.f32 %v91_v19 }
 0x18b   :  { %v123_v20 = vpop.eup %122 }
 0x18c   :  { %v93_v21 = vsel %vm86_vm2, %v123_v20, 0.0 }
 0x18d   :  { %94 = vadd.xlane.f32.xlu0 %v93_v21 }
 0x200   :  { %v95_v22 = vpop.xlane.xlu0 %94 }
 0x201   :  { %124 = vrcp.f32 %v95_v22  ;;  %v107_v26 = vand.u32 2147483648, %v95_v22  ;;  %v105_v28 = vand.u32 2147483647, %v95_v22  ;;  %vm101_vm4 = vweird.f32 %v95_v22 }
 0x203   :  { %v108_v30 = vor.u32 1.1754944e-38, %v107_v26  ;;  %vm106_vm6 = vcmp.eq.f32.partialorder %v105_v28, 8.507059e+37 }
 0x207   :  { %v125_v23 = vpop.eup %124 }
 0x208   :  { %v97_v24 = vmul.f32 %v125_v23, %v95_v22  ;;  %vm102_vm3 = vweird.f32 %v125_v23 }
 0x209   :  { %vm103_vm5 = vmor %vm101_vm4, %vm102_vm3 }
 0x20a   :  { %v98_v25 = vsub.f32 1.0, %v97_v24 }
 0x20c   :  { %v99_v27 = vmul.f32 %v125_v23, %v98_v25 }
 0x20e   :  { %v100_v29 = vadd.f32 %v125_v23, %v99_v27 }
 0x210   :  { %v104_v31 = vsel %vm103_vm5, %v125_v23, %v100_v29 }
 0x211   :  { %v109_v32 = vsel %vm106_vm6, %v108_v30, %v104_v31 }
 0x212   :  { %v110_v33 = vmul.f32 %v109_v32, %v93_v21 }
 0x214   :  { %111 = vst [vmem:[%s188_s5] sm:$0xff] %v110_v33 }

</bundles_post_ra>
